<compile_context>
chip_gen: v5e
topology: v5e:2x2
jax: 0.10.0
libtpu: 0.0.40
codegen_flags: <defaults>
</compile_context>

<pallas_src>
import functools

import jax
import jax.numpy as jnp
from jax.experimental import pallas as pl
from jax.experimental.pallas import tpu as pltpu

hidden_size = 64
window_size = 3
input_size = window_size
output_size = 1

_LANE = 128  # TPU lane width


def _round_up(n, m):
    return ((n + m - 1) // m) * m


def _mlp_kernel(xt_ref, w1_ref, b1_ref, w2_ref, b2_ref, ot_ref):
    # Transposed (lane-dense) layout: batch on lanes, features on sublanes.
    #   xt_ref : (input_size,  TB)            activations
    #   w1_ref : (hidden_size, input_size)    fc1.weight (PyTorch layout)
    #   b1_ref : (hidden_size, 1)             fc1.bias as a column
    #   w2_ref : (hidden_size, output_size)   fc2.weight transposed
    #   b2_ref : (output_size, 1)             fc2.bias
    #   ot_ref : (output_size, TB)            lane-dense output
    xt = xt_ref[...]
    w1 = w1_ref[...]

    # Layer 1: K = input_size = 3 -> three broadcasted VPU FMAs instead of a
    # 3-wide MXU matmul (no MXU push/drain latency for negligible work).
    acc = w1[:, 0:1] * xt[0:1, :]
    for k in range(1, input_size):
        acc = acc + w1[:, k:k + 1] * xt[k:k + 1, :]
    h = jnp.maximum(acc + b1_ref[...], 0.0)            # (hidden, TB)

    # Layer 2: output_size = 1 -> broadcasted multiply + sublane reduction
    # (VPU + XLU) instead of an M=1 matmul.
    y = jnp.sum(w2_ref[...] * h, axis=0, keepdims=True)  # (1, TB)
    ot_ref[...] = (y + b2_ref[...]).astype(ot_ref.dtype)


@functools.partial(jax.jit, static_argnames=("batch_tile",))
def simple_nn_forward(x, w1, b1, w2, b2, *, batch_tile=512):
    """SimpleNN forward pass.

    x : (B, input_size) float32
    w1: (hidden_size, input_size)   fc1.weight   (PyTorch layout)
    b1: (hidden_size,)              fc1.bias
    w2: (output_size, hidden_size)  fc2.weight   (PyTorch layout)
    b2: (output_size,)              fc2.bias
    Returns (B, output_size) float32.
    """
    B = x.shape[0]
    # Batch lives on the lane axis -> tiles must be multiples of 128.
    tb = max(_LANE, min(_round_up(batch_tile, _LANE), _round_up(B, _LANE)))
    b_pad = _round_up(B, tb)
    n_tiles = b_pad // tb

    # Lane-dense transposed activations: (input_size, B_pad), zero-padded rows
    # are computed and then sliced away (cheap, result stays finite).
    xt = jnp.pad(x.T, ((0, 0), (0, b_pad - B)))
    b1_c = b1.reshape(hidden_size, 1)
    w2_c = w2.T.reshape(hidden_size, output_size)
    b2_c = b2.reshape(output_size, 1)

    const = lambda i: (0, 0)  # weights/biases: resident, DMA'd once

    out_t = pl.pallas_call(
        _mlp_kernel,
        out_shape=jax.ShapeDtypeStruct((output_size, b_pad), jnp.float32),
        grid=(n_tiles,),
        in_specs=[
            pl.BlockSpec((input_size, tb), lambda i: (0, i)),        # x^T tile
            pl.BlockSpec((hidden_size, input_size), const),          # w1
            pl.BlockSpec((hidden_size, 1), const),                   # b1
            pl.BlockSpec((hidden_size, output_size), const),         # w2^T
            pl.BlockSpec((output_size, 1), const),                   # b2
        ],
        out_specs=pl.BlockSpec((output_size, tb), lambda i: (0, i)),
        compiler_params=pltpu.CompilerParams(
            dimension_semantics=("parallel",)),
    )(xt, w1, b1_c, w2_c, b2_c)

    return out_t[:, :B].T  # back to (B, output_size)


if __name__ == "__main__":
    key = jax.random.PRNGKey(0)
    k_x, k1, k2, k3, k4 = jax.random.split(key, 5)

    # Small-ish batch that still exercises padding (260 -> 384 lanes) and a
    # multi-step (grid=3) pipeline with a 128-lane batch tile.
    batch = 260
    x = jax.random.normal(k_x, (batch, input_size), dtype=jnp.float32)

    # Deterministic params in PyTorch nn.Linear layout / init ranges.
    lim1 = 1.0 / (input_size ** 0.5)
    lim2 = 1.0 / (hidden_size ** 0.5)
    w1 = jax.random.uniform(k1, (hidden_size, input_size),
                            minval=-lim1, maxval=lim1, dtype=jnp.float32)
    b1 = jax.random.uniform(k2, (hidden_size,),
                            minval=-lim1, maxval=lim1, dtype=jnp.float32)
    w2 = jax.random.uniform(k3, (output_size, hidden_size),
                            minval=-lim2, maxval=lim2, dtype=jnp.float32)
    b2 = jax.random.uniform(k4, (output_size,),
                            minval=-lim2, maxval=lim2, dtype=jnp.float32)

    out = simple_nn_forward(x, w1, b1, w2, b2, batch_tile=128)
    out = jax.block_until_ready(out)

    # Reference: same math as the PyTorch module.
    ref = jnp.maximum(x @ w1.T + b1, 0.0) @ w2.T + b2
    assert out.shape == (batch, output_size)
    assert jnp.allclose(out, ref, atol=1e-5, rtol=1e-5), \
        float(jnp.max(jnp.abs(out - ref)))

    print("KERNEL_OK")
</pallas_src>

<mosaic_0001>
module attributes {stable_mosaic.version = 11 : i64} {
  func.func @_mlp_kernel(%arg0: i32, %arg1: memref<3x128xf32, #tpu.memory_space<vmem>>, %arg2: memref<64x3xf32, #tpu.memory_space<vmem>>, %arg3: memref<64x1xf32, #tpu.memory_space<vmem>>, %arg4: memref<64x1xf32, #tpu.memory_space<vmem>>, %arg5: memref<1x1xf32, #tpu.memory_space<vmem>>, %arg6: memref<1x128xf32, #tpu.memory_space<vmem>>) attributes {dimension_semantics = [#tpu.dimension_semantics<parallel>], iteration_bounds = array<i64: 3>, scalar_prefetch = 0 : i64, scratch_operands = 0 : i64, tpu.core_type = #tpu.core_type<tc>, window_params = [{transform_indices = @transform_0, window_bounds = array<i64: 3, 128>}, {pipeline_mode = #tpu.pipeline_mode<synchronous>, transform_indices = @transform_1, window_bounds = array<i64: 64, 3>}, {pipeline_mode = #tpu.pipeline_mode<synchronous>, transform_indices = @transform_2, window_bounds = array<i64: 64, 1>}, {pipeline_mode = #tpu.pipeline_mode<synchronous>, transform_indices = @transform_3, window_bounds = array<i64: 64, 1>}, {pipeline_mode = #tpu.pipeline_mode<synchronous>, transform_indices = @transform_4, window_bounds = array<i64: 1, 1>}, {transform_indices = @transform_5, window_bounds = array<i64: 1, 128>}]} {
    %c0 = arith.constant 0 : index
    %c0_0 = arith.constant 0 : index
    %0 = vector.load %arg1[%c0, %c0_0] : memref<3x128xf32, #tpu.memory_space<vmem>>, vector<3x128xf32>
    %c0_1 = arith.constant 0 : index
    %c0_2 = arith.constant 0 : index
    %1 = vector.load %arg2[%c0_1, %c0_2] : memref<64x3xf32, #tpu.memory_space<vmem>>, vector<64x3xf32>
    %2 = vector.extract_strided_slice %1 {offsets = [0, 0], sizes = [64, 1], strides = [1, 1]} : vector<64x3xf32> to vector<64x1xf32>
    %3 = vector.extract_strided_slice %0 {offsets = [0, 0], sizes = [1, 128], strides = [1, 1]} : vector<3x128xf32> to vector<1x128xf32>
    %4 = vector.broadcast %2 : vector<64x1xf32> to vector<64x128xf32>
    %5 = vector.broadcast %3 : vector<1x128xf32> to vector<64x128xf32>
    %6 = arith.mulf %4, %5 : vector<64x128xf32>
    %7 = vector.extract_strided_slice %1 {offsets = [0, 1], sizes = [64, 1], strides = [1, 1]} : vector<64x3xf32> to vector<64x1xf32>
    %8 = vector.extract_strided_slice %0 {offsets = [1, 0], sizes = [1, 128], strides = [1, 1]} : vector<3x128xf32> to vector<1x128xf32>
    %9 = vector.broadcast %7 : vector<64x1xf32> to vector<64x128xf32>
    %10 = vector.broadcast %8 : vector<1x128xf32> to vector<64x128xf32>
    %11 = arith.mulf %9, %10 : vector<64x128xf32>
    %12 = arith.addf %6, %11 : vector<64x128xf32>
    %13 = vector.extract_strided_slice %1 {offsets = [0, 2], sizes = [64, 1], strides = [1, 1]} : vector<64x3xf32> to vector<64x1xf32>
    %14 = vector.extract_strided_slice %0 {offsets = [2, 0], sizes = [1, 128], strides = [1, 1]} : vector<3x128xf32> to vector<1x128xf32>
    %15 = vector.broadcast %13 : vector<64x1xf32> to vector<64x128xf32>
    %16 = vector.broadcast %14 : vector<1x128xf32> to vector<64x128xf32>
    %17 = arith.mulf %15, %16 : vector<64x128xf32>
    %18 = arith.addf %12, %17 : vector<64x128xf32>
    %c0_3 = arith.constant 0 : index
    %c0_4 = arith.constant 0 : index
    %19 = vector.load %arg3[%c0_3, %c0_4] : memref<64x1xf32, #tpu.memory_space<vmem>>, vector<64x1xf32>
    %20 = vector.broadcast %19 : vector<64x1xf32> to vector<64x128xf32>
    %21 = arith.addf %18, %20 : vector<64x128xf32>
    %cst = arith.constant 0.000000e+00 : f32
    %22 = vector.broadcast %cst : f32 to vector<64x128xf32>
    %23 = arith.maximumf %21, %22 : vector<64x128xf32>
    %c0_5 = arith.constant 0 : index
    %c0_6 = arith.constant 0 : index
    %24 = vector.load %arg4[%c0_5, %c0_6] : memref<64x1xf32, #tpu.memory_space<vmem>>, vector<64x1xf32>
    %25 = vector.broadcast %24 : vector<64x1xf32> to vector<64x128xf32>
    %26 = arith.mulf %25, %23 : vector<64x128xf32>
    %cst_7 = arith.constant dense<0.000000e+00> : vector<128xf32>
    %27 = vector.multi_reduction <add>, %26, %cst_7 [0] : vector<64x128xf32> to vector<128xf32>
    %28 = vector.shape_cast %27 : vector<128xf32> to vector<1x128xf32>
    %c0_8 = arith.constant 0 : index
    %c0_9 = arith.constant 0 : index
    %29 = vector.load %arg5[%c0_8, %c0_9] : memref<1x1xf32, #tpu.memory_space<vmem>>, vector<1x1xf32>
    %30 = vector.broadcast %29 : vector<1x1xf32> to vector<1x128xf32>
    %31 = arith.addf %28, %30 : vector<1x128xf32>
    %c0_10 = arith.constant 0 : index
    %c0_11 = arith.constant 0 : index
    %32 = vector.load %arg6[%c0_10, %c0_11] : memref<1x128xf32, #tpu.memory_space<vmem>>, vector<1x128xf32>
    tpu.vector_store %arg6[%c0_10, %c0_11], %31 {strides = array<i32>} : memref<1x128xf32, #tpu.memory_space<vmem>>, vector<1x128xf32>,
    return
  }
  func.func @transform_0(%arg0: i32) -> (i32, i32) {
    %c0_i32 = arith.constant 0 : i32
    %c0_i32_0 = arith.constant 0 : i32
    return %c0_i32, %arg0 : i32, i32
  }
  func.func @transform_1(%arg0: i32) -> (i32, i32) {
    %c0_i32 = arith.constant 0 : i32
    %c0_i32_0 = arith.constant 0 : i32
    %c0_i32_1 = arith.constant 0 : i32
    return %c0_i32, %c0_i32_0 : i32, i32
  }
  func.func @transform_2(%arg0: i32) -> (i32, i32) {
    %c0_i32 = arith.constant 0 : i32
    %c0_i32_0 = arith.constant 0 : i32
    %c0_i32_1 = arith.constant 0 : i32
    return %c0_i32, %c0_i32_0 : i32, i32
  }
  func.func @transform_3(%arg0: i32) -> (i32, i32) {
    %c0_i32 = arith.constant 0 : i32
    %c0_i32_0 = arith.constant 0 : i32
    %c0_i32_1 = arith.constant 0 : i32
    return %c0_i32, %c0_i32_0 : i32, i32
  }
  func.func @transform_4(%arg0: i32) -> (i32, i32) {
    %c0_i32 = arith.constant 0 : i32
    %c0_i32_0 = arith.constant 0 : i32
    %c0_i32_1 = arith.constant 0 : i32
    return %c0_i32, %c0_i32_0 : i32, i32
  }
  func.func @transform_5(%arg0: i32) -> (i32, i32) {
    %c0_i32 = arith.constant 0 : i32
    %c0_i32_0 = arith.constant 0 : i32
    return %c0_i32, %arg0 : i32, i32
  }
}

</mosaic_0001>

<bundles_post_ra>
// kernel: simple_nn_forward.1
= control target key start
LH: loop header
LB: loop body
LE: loop exit
PB: predicated region body
PF: predicated region fallthrough
CT: control target
= control target key end

     0   :  { %s639_s20 = smov 0   ;;  %s771_s0 = inlined_call_operand.vmem [shape: f32[3,384], index: 0, kind: input, shape index: {}]   ;;  %s772_s1 = inlined_call_operand.vmem [shape: f32[64,3], index: 1, kind: input, shape index: {}]   ;;  %s773_s2 = inlined_call_operand.vmem [shape: f32[64,1], index: 2, kind: input, shape index: {}]   ;;  %s774_s3 = inlined_call_operand.vmem [shape: f32[64,1], index: 3, kind: input, shape index: {}]   ;;  %s775_s4 = inlined_call_operand.<no memory space> [shape: f32[1,1], index: 4, kind: input, shape index: {}]   ;;  %s776_s5 = inlined_call_operand.vmem [shape: f32[1,384], index: 5, kind: output, shape index: {}]  }
   0x1   :  { %v10_v0 = vstv %s775_s4 }
   0x2   :  { %11 = vst [vmem:[#allocation2] sm:$0x1] %v10_v0 }
   0x3 LB: > { %s565_s21 = sadd.s32 4294967295, %s601_s20   ;;  %p569_p0 = scmp.ge.s32.totalorder %s601_s20, 1  ;;  %s601_s20 = sphi %s639_s20, %s17_s20  }
   0x4   : > { %p188_p1 = scmp.lt.s32.totalorder %s601_s20, 4 }
   0x6   : > { %p189_p2 = pnand %p569_p0, %p188_p1 }
   0x7   : > { %p213_p3 = scmp.lt.s32.totalorder (!%p189_p2), %s565_s21, 2 }
   0x8   : > { %192 = sbr.rel (%p189_p2) target bundleno = 261 (0x105), region = 40 }
   0xd   : > { %v225_v1 = vld [vmem:[%s772_s1 + $0x20] sm:$0xff]  ;;  %v223_v2 = vld [vmem:[%s772_s1 + $0x10] sm:$0xff]  ;;  %v222_v3 = vld [vmem:[%s772_s1 + $0x8] sm:$0xff]  ;;  %v603_v4 = vmov 1   ;;  %v604_v5 = vmov 0   ;;  %v605_v11 = vmov 2  }
   0xe   : > { %587 = vset.pattern.permute.xlu0 %v603_v4  ;;  %585 = vset.pattern.permute.xlu2 %v604_v5  ;;  %v226_v6 = vld [vmem:[%s772_s1 + $0x28] sm:$0xff]  ;;  %v224_v7 = vld [vmem:[%s772_s1 + $0x18] sm:$0xff]  ;;  %v227_v8 = vld [vmem:[%s772_s1 + $0x30] sm:$0xff]  ;;  %s778_s21 = smov (!%p213_p3, %s565_s21), 2 }
   0xf   : > { %584 = vset.pattern.permute.xlu1 %v604_v5  ;;  %251 = vperm.xlu2 %585, %v225_v1   ;;  %v228_v9 = vld [vmem:[%s772_s1 + $0x38] sm:$0xff]  ;;  %v221_v10 = vld [vmem:[%s772_s1] sm:$0xff]  ;;  %v377_v12 = vld [vmem:[%s773_s2 + $0x8] sm:$0xff]  ;;  %s570_s22 = sshll.u32 %s778_s21, 2  ;;  %s219_s27 = scalar_lea.vmem %s776_s5, %s778_s21 }
  0x10   : > { %241 = vperm.xlu1 %584, %v223_v2   ;;  %283 = vperm.xlu0 %587, %v222_v3   ;;  %v440_v13 = vld [vmem:[%s774_s3] sm:$0xff]  ;;  %v443_v15 = vld [vmem:[%s774_s3 + $0x18] sm:$0xff]  ;;  %v378_v16 = vld [vmem:[%s773_s2 + $0x10] sm:$0xff]  ;;  %s216_s24 = scalar_lea.vmem %s771_s0, %s570_s22 }
  0x11   : > { %v376_v14 = vld [vmem:[%s773_s2] sm:$0xff]  ;;  %v379_v17 = vld [vmem:[%s773_s2 + $0x18] sm:$0xff]  ;;  %v381_v20 = vld [vmem:[%s773_s2 + $0x28] sm:$0xff] }
  0x12   : > { %v383_v18 = vld [vmem:[%s773_s2 + $0x38] sm:$0xff]  ;;  %v380_v19 = vld [vmem:[%s773_s2 + $0x20] sm:$0xff]  ;;  %v441_v22 = vld [vmem:[%s774_s3 + $0x8] sm:$0xff] }
  0x13   : > { %v447_v21 = vld [vmem:[%s774_s3 + $0x38] sm:$0xff]  ;;  %v442_v23 = vld [vmem:[%s774_s3 + $0x10] sm:$0xff]  ;;  %v444_v26 = vld [vmem:[%s774_s3 + $0x20] sm:$0xff] }
  0x14   : > { %v382_v25 = vld [vmem:[%s773_s2 + $0x30] sm:$0xff]  ;;  %v445_v28 = vld [vmem:[%s774_s3 + $0x28] sm:$0xff]  ;;  %v509_v31 = vld [vmem:[#allocation2] sm:$0x1] }
  0x15   : > { %v446_v29 = vld [vmem:[%s774_s3 + $0x30] sm:$0xff]  ;;  %v220_v34 = vld [vmem:[%s216_s24] sm:$0x7] }
  0x16   : > { %v733_v35 = vperm.slane %v220_v34, 1  ;;  %v735_v37 = vperm.slane %v220_v34, 0 }
  0x17   : > { %256 = vperm.xlu2 %585, %v226_v6  }
  0x18   : > { %246 = vperm.xlu1 %584, %v224_v7   ;;  %303 = vperm.xlu0 %587, %v227_v8  }
  0x1f   : > { %586 = vset.pattern.permute.xlu2 %v603_v4 }
  0x20   : > { %266 = vperm.xlu1 %584, %v228_v9   ;;  %590 = vset.pattern.permute.xlu0 %v605_v11 }
  0x21   : > { %332 = vperm.xlu0 %590, %v222_v3   ;;  %279 = vperm.xlu2 %586, %v221_v10  }
  0x28   : > { %588 = vset.pattern.permute.xlu1 %v603_v4 }
  0x29   : > { %287 = vperm.xlu1 %588, %v223_v2   ;;  %352 = vperm.xlu0 %590, %v227_v8  }
  0x2a   : > { %291 = vperm.xlu2 %586, %v224_v7  }
  0x31   : > { %295 = vperm.xlu1 %588, %v225_v1   ;;  %592 = vset.pattern.permute.xlu0 %v604_v5 }
  0x32   : > { %299 = vperm.xlu2 %586, %v226_v6   ;;  %231 = vperm.xlu0 %592, %v221_v10  }
  0x39   : > { %307 = vperm.xlu1 %588, %v228_v9  }
  0x3a   : > { %589 = vset.pattern.permute.xlu2 %v605_v11  ;;  %236 = vperm.xlu0 %592, %v222_v3  }
  0x3b   : > { %328 = vperm.xlu2 %589, %v221_v10  }
  0x41   : > { %591 = vset.pattern.permute.xlu1 %v605_v11 }
  0x42   : > { %336 = vperm.xlu1 %591, %v223_v2   ;;  %261 = vperm.xlu0 %592, %v227_v8  }
  0x43   : > { %340 = vperm.xlu2 %589, %v224_v7  }
  0x4a   : > { %344 = vperm.xlu1 %591, %v225_v1   ;;  %391 = vperm.xlu0 %592, %v377_v12  }
  0x4b   : > { %348 = vperm.xlu2 %589, %v226_v6  }
  0x52   : > { %356 = vperm.xlu1 %591, %v228_v9   ;;  %450 = vperm.xlu0 %592, %v440_v13  }
  0x53   : > { %593 = vset.pattern.permute.xlu2 %v604_v5 }
  0x54   : > { %386 = vperm.xlu2 %593, %v376_v14  }
  0x5a   : > { %594 = vset.pattern.permute.xlu1 %v604_v5  ;;  %465 = vperm.xlu0 %592, %v443_v15   ;;  %v359_v5 = vperm.slane %v220_v34, 2 }
  0x5b   : > { %396 = vperm.xlu1 %594, %v378_v16  }
  0x5c   : > { %401 = vperm.xlu2 %593, %v379_v17  }
  0x62   : > { %421 = vperm.xlu0 %592, %v383_v18  }
  0x63   : > { %406 = vperm.xlu1 %594, %v380_v19  }
  0x64   : > { %411 = vperm.xlu2 %593, %v381_v20  }
  0x69   : > { %v707_v24 = vpop.permute.xlu2 %251 }
  0x6a   : > { %485 = vperm.xlu0 %592, %v447_v21   ;;  %v274_v15 = vmul.f32 %v735_v37, %v707_v24 }
  0x6b   : > { %455 = vperm.xlu1 %594, %v441_v22  }
  0x6c   : > { %460 = vperm.xlu2 %593, %v442_v23  }
  0x71   : > { %v715_v27 = vpop.permute.xlu2 %256 }
  0x73   : > { %416 = vperm.xlu1 %594, %v382_v25  }
  0x74   : > { %470 = vperm.xlu2 %593, %v444_v26  }
  0x7b   : > { %475 = vperm.xlu1 %594, %v445_v28   ;;  %v280_v30 = vpop.permute.xlu2 %279 }
  0x7c   : > { %480 = vperm.xlu2 %593, %v446_v29   ;;  %v311_v4 = vmul.f32 %v733_v35, %v280_v30 }
  0x82   : > { %v242_v32 = vpop.permute.xlu1 %241  ;;  %v284_v33 = vpop.permute.xlu0 %283 }
  0x83   : > { %512 = vperm.xlu1 %594, %v509_v31   ;;  %v272_v47 = vmul.f32 %v735_v37, %v242_v32  ;;  %v312_v7 = vmul.f32 %v733_v35, %v284_v33 }
  0x84   : > { %v292_v36 = vpop.permute.xlu2 %291 }
  0x85   : > { %v314_v38 = vmul.f32 %v733_v35, %v292_v36 }
  0x8a   : > { %v247_v39 = vpop.permute.xlu1 %246  ;;  %v739_v41 = vpop.permute.xlu0 %303 }
  0x8b   : > { %v273_v40 = vmul.f32 %v735_v37, %v247_v39 }
  0x8c   : > { %v300_v44 = vpop.permute.xlu2 %299 }
  0x8d   : > { %v322_v42 = vadd.f32 %v314_v38, %v273_v40 }
  0x92   : > { %v741_v43 = vpop.permute.xlu1 %266 }
  0x93   : > { %v333_v45 = vpop.permute.xlu0 %332 }
  0x94   : > { %v361_v13 = vmul.f32 %v359_v5, %v333_v45 }
  0x95   : > { %v329_v49 = vpop.permute.xlu2 %328 }
  0x96   : > { %v360_v8 = vmul.f32 %v359_v5, %v329_v49 }
  0x9b   : > { %v288_v46 = vpop.permute.xlu1 %287  ;;  %v745_v51 = vpop.permute.xlu0 %352 }
  0x9c   : > { %v313_v48 = vmul.f32 %v733_v35, %v288_v46  ;;  %v316_v46 = vmul.f32 %v733_v35, %v300_v44 }
  0x9d   : > { %v341_v53 = vpop.permute.xlu2 %340 }
  0x9e   : > { %v321_v50 = vadd.f32 %v313_v48, %v272_v47  ;;  %v363_v18 = vmul.f32 %v359_v5, %v341_v53  ;;  %v317_v47 = vmul.f32 %v733_v35, %v739_v41  ;;  %v277_v41 = vmul.f32 %v735_v37, %v741_v43 }
  0xa0   : > { %v371_v29 = vadd.f32 %v363_v18, %v322_v42 }
  0xa3   : > { %v296_v52 = vpop.permute.xlu1 %295 }
  0xa4   : > { %v232_v54 = vpop.permute.xlu0 %231  ;;  %v315_v14 = vmul.f32 %v733_v35, %v296_v52  ;;  %v275_v52 = vmul.f32 %v735_v37, %v715_v27 }
  0xa5   : > { %v349_v56 = vpop.permute.xlu2 %348  ;;  %v270_v1 = vmul.f32 %v735_v37, %v232_v54 }
  0xa6   : > { %v323_v23 = vadd.f32 %v315_v14, %v274_v15  ;;  %v365_v53 = vmul.f32 %v359_v5, %v349_v56 }
  0xa7   : > { %v319_v9 = vadd.f32 %v311_v4, %v270_v1 }
  0xa9   : > { %v368_v16 = vadd.f32 %v360_v8, %v319_v9 }
  0xab   : > { %v308_v55 = vpop.permute.xlu1 %307 }
  0xac   : > { %v237_v57 = vpop.permute.xlu0 %236  ;;  %v318_v44 = vmul.f32 %v733_v35, %v308_v55 }
  0xad   : > { %v271_v3 = vmul.f32 %v735_v37, %v237_v57 }
  0xae   : > { %v387_v59 = vpop.permute.xlu2 %386 }
  0xaf   : > { %v320_v11 = vadd.f32 %v312_v7, %v271_v3  ;;  %v424_v22 = vadd.f32 %v387_v59, %v368_v16  ;;  %v324_v59 = vadd.f32 %v316_v46, %v275_v52  ;;  %v326_v7 = vadd.f32 %v318_v44, %v277_v41 }
  0xb1   : > { %v369_v20 = vadd.f32 %v361_v13, %v320_v11  ;;  %v432_v31 = vmax.f32 %v424_v22, 0.0  ;;  %v373_v3 = vadd.f32 %v365_v53, %v324_v59 }
  0xb4   : > { %v337_v58 = vpop.permute.xlu1 %336  ;;  %v262_v61 = vpop.permute.xlu0 %261 }
  0xb5   : > { %v362_v12 = vmul.f32 %v359_v5, %v337_v58  ;;  %v276_v39 = vmul.f32 %v735_v37, %v262_v61  ;;  %v366_v61 = vmul.f32 %v359_v5, %v745_v51 }
  0xb6   : > { %v402_v63 = vpop.permute.xlu2 %401 }
  0xb7   : > { %v370_v21 = vadd.f32 %v362_v12, %v321_v50  ;;  %v427_v33 = vadd.f32 %v402_v63, %v371_v29  ;;  %v325_v54 = vadd.f32 %v317_v47, %v276_v39 }
  0xb9   : > { %v435_v48 = vmax.f32 %v427_v33, 0.0  ;;  %v374_v27 = vadd.f32 %v366_v61, %v325_v54 }
  0xbc   : > { %v345_v60 = vpop.permute.xlu1 %344  ;;  %v392_v0 = vpop.permute.xlu0 %391 }
  0xbd   : > { %v364_v19 = vmul.f32 %v359_v5, %v345_v60  ;;  %v425_v25 = vadd.f32 %v392_v0, %v369_v20 }
  0xbe   : > { %v412_v6 = vpop.permute.xlu2 %411 }
  0xbf   : > { %v372_v30 = vadd.f32 %v364_v19, %v323_v23  ;;  %v433_v34 = vmax.f32 %v425_v25, 0.0  ;;  %v429_v8 = vadd.f32 %v412_v6, %v373_v3 }
  0xc1   : > { %v437_v11 = vmax.f32 %v429_v8, 0.0 }
  0xc4   : > { %v357_v62 = vpop.permute.xlu1 %356  ;;  %v451_v10 = vpop.permute.xlu0 %450 }
  0xc5   : > { %v488_v40 = vmul.f32 %v451_v10, %v432_v31  ;;  %v367_v4 = vmul.f32 %v359_v5, %v357_v62 }
  0xc6   : > { %v461_v28 = vpop.permute.xlu2 %460 }
  0xc7   : > { %v375_v10 = vadd.f32 %v367_v4, %v326_v7 }
  0xcc   : > { %v466_v32 = vpop.permute.xlu0 %465 }
  0xcd   : > { %v397_v2 = vpop.permute.xlu1 %396  ;;  %v491_v57 = vmul.f32 %v466_v32, %v435_v48 }
  0xce   : > { %v426_v26 = vadd.f32 %v397_v2, %v370_v21  ;;  %v471_v60 = vpop.permute.xlu2 %470 }
  0xd0   : > { %v434_v36 = vmax.f32 %v426_v26, 0.0 }
  0xd2   : > { %v490_v49 = vmul.f32 %v461_v28, %v434_v36 }
  0xd4   : > { %v422_v1 = vpop.permute.xlu0 %421 }
  0xd5   : > { %v407_v17 = vpop.permute.xlu1 %406  ;;  %v431_v12 = vadd.f32 %v422_v1, %v375_v10 }
  0xd6   : > { %v428_v38 = vadd.f32 %v407_v17, %v372_v30  ;;  %v481_v55 = vpop.permute.xlu2 %480 }
  0xd7   : > { %v439_v15 = vmax.f32 %v431_v12, 0.0 }
  0xd8   : > { %v436_v42 = vmax.f32 %v428_v38, 0.0 }
  0xda   : > { %v492_v63 = vmul.f32 %v471_v60, %v436_v42 }
  0xdc   : > { %v486_v14 = vpop.permute.xlu0 %485 }
  0xdd   : > { %v456_v24 = vpop.permute.xlu1 %455  ;;  %v495_v16 = vmul.f32 %v486_v14, %v439_v15 }
  0xde   : > { %v489_v45 = vmul.f32 %v456_v24, %v433_v34 }
  0xe0   : > { %v496_v50 = vadd.f32 %v489_v45, %v488_v40 }
  0xe2   : > { %v497_v58 = vadd.f32 %v496_v50, %v490_v49 }
  0xe4   : > { %v498_v0 = vadd.f32 %v497_v58, %v491_v57 }
  0xe5   : > { %v417_v2 = vpop.permute.xlu1 %416 }
  0xe6   : > { %v499_v56 = vadd.f32 %v498_v0, %v492_v63  ;;  %v430_v9 = vadd.f32 %v417_v2, %v374_v27 }
  0xe8   : > { %v438_v51 = vmax.f32 %v430_v9, 0.0 }
  0xea   : > { %v494_v37 = vmul.f32 %v481_v55, %v438_v51 }
  0xed   : > { %v476_v13 = vpop.permute.xlu1 %475 }
  0xee   : > { %v493_v35 = vmul.f32 %v476_v13, %v437_v11 }
  0xf0   : > { %v500_v43 = vadd.f32 %v499_v56, %v493_v35 }
  0xf2   : > { %v501_v17 = vadd.f32 %v500_v43, %v494_v37 }
  0xf4   : > { %v502_v62 = vadd.f32 %v501_v17, %v495_v16 }
  0xf5   : > { %v513_v20 = vpop.permute.xlu1 %512 }
  0xf6   : > { %v503_v5 = vrot.slane %v502_v62, 4  ;;  %v515_v23 = vperm.slane %v513_v20, 0 }
  0xf8   : > { %v504_v18 = vadd.f32 %v503_v5, %v502_v62 }
  0xfa   : > { %v505_v19 = vrot.slane %v504_v18, 2 }
  0xfc   : > { %v506_v6 = vadd.f32 %v505_v19, %v504_v18 }
  0xfe   : > { %v507_v21 = vrot.slane %v506_v6, 1 }
 0x100   : > { %v508_v22 = vadd.f32 %v507_v21, %v506_v6 }
 0x102   : > { %v516_v25 = vadd.f32 %v515_v23, %v508_v22 }
 0x104   : > { %517 = vst [vmem:[%s219_s27] sm:$0x1] %v516_v25 }
 0x105 PF: > { %s17_s20 = sadd.s32 1, %s601_s20  }
 0x106   : > { %p14_p4 = scmp.ge.s32.totalorder %s17_s20, 5  }
 0x108   :  { %16 = sbr.rel (!%p14_p4) target bundleno = 3 (0x3), region = 70 }

</bundles_post_ra>
